<compile_context>
chip_gen: v6e
topology: v6e:2x2x1
jax: 0.10.0
libtpu: 0.0.40
codegen_flags: <defaults>
</compile_context>

<pallas_src>
import functools

import jax
import jax.numpy as jnp
from jax.experimental import pallas as pl
from jax.experimental.pallas import tpu as pltpu


def _copy_kernel(x_ref, o_ref):
    # One lane-dense (rows, F) slab in VMEM: plain full-width copy.
    o_ref[...] = x_ref[...]


@functools.partial(jax.jit, static_argnums=1)
def expand_temporal_dim(x_seq: jax.Array, T: int) -> jax.Array:
    """Pallas equivalent of ExpandTemporalDim(T)(x_seq): (T*B, ...) -> (T, B, ...)."""
    TB = x_seq.shape[0]
    assert TB % T == 0, "leading dim must be divisible by T"
    B = TB // T
    rest = tuple(int(d) for d in x_seq.shape[1:])

    # Free, wrapper-side metadata reshape to a lane-dense 2D slab.
    F = 1
    for d in rest:
        F *= d
    x2 = x_seq.reshape(TB, F)

    itemsize = jnp.dtype(x_seq.dtype).itemsize
    # ~2 MiB tiles: with double-buffered input + output (~4x tile resident)
    # this stays well inside 16 MiB scoped VMEM (v5e) and 32 MiB (v6e/v7x),
    # while being large enough to sit near the HBM roofline.
    target_tile_bytes = 2 * 1024 * 1024
    rows_per_tile = max(1, target_tile_bytes // max(1, F * itemsize))
    if rows_per_tile >= TB:
        block_rows = TB  # full-dim block is always a legal block shape
    else:
        block_rows = min(TB, max(8, (rows_per_tile // 8) * 8))  # sublane multiple

    grid = (pl.cdiv(TB, block_rows),)

    out2 = pl.pallas_call(
        _copy_kernel,
        out_shape=jax.ShapeDtypeStruct((TB, F), x_seq.dtype),
        grid_spec=pltpu.PrefetchScalarGridSpec(
            num_scalar_prefetch=0,
            grid=grid,
            in_specs=[pl.BlockSpec((block_rows, F), lambda i: (i, 0))],
            out_specs=pl.BlockSpec((block_rows, F), lambda i: (i, 0)),
        ),
        # Identity copy: let the output reuse the (intermediate) input buffer.
        input_output_aliases={0: 0},
        compiler_params=pltpu.CompilerParams(
            dimension_semantics=("parallel",),
            vmem_limit_bytes=32 * 1024 * 1024,
        ),
    )(x2)

    # Free metadata reshape back to the expanded temporal layout.
    return out2.reshape((T, B) + rest)


if __name__ == "__main__":
    T = 4
    B = 2
    C, H, W = 4, 16, 16

    key = jax.random.PRNGKey(0)
    x_seq = jax.random.normal(key, (T * B, C, H, W), dtype=jnp.float32)

    y = expand_temporal_dim(x_seq, T)
    y = jax.block_until_ready(y)

    # Reference semantics: plain reshape/view.
    y_ref = x_seq.reshape(T, B, C, H, W)
    assert y.shape == (T, B, C, H, W)
    assert y.dtype == x_seq.dtype
    assert bool(jnp.array_equal(y, y_ref))

    print("KERNEL_OK")
</pallas_src>

<mosaic_0001>
module attributes {stable_mosaic.version = 11 : i64} {
  func.func @_copy_kernel(%arg0: i32, %arg1: memref<8x1024xf32, #tpu.memory_space<vmem>>, %arg2: memref<8x1024xf32, #tpu.memory_space<vmem>>) attributes {dimension_semantics = [#tpu.dimension_semantics<parallel>], iteration_bounds = array<i64: 1>, scalar_prefetch = 0 : i64, scratch_operands = 0 : i64, tpu.core_type = #tpu.core_type<tc>, window_params = [{transform_indices = @transform_0, window_bounds = array<i64: 8, 1024>}, {transform_indices = @transform_1, window_bounds = array<i64: 8, 1024>}]} {
    %c0 = arith.constant 0 : index
    %c0_0 = arith.constant 0 : index
    %0 = vector.load %arg1[%c0, %c0_0] : memref<8x1024xf32, #tpu.memory_space<vmem>>, vector<8x1024xf32>
    %c0_1 = arith.constant 0 : index
    %c0_2 = arith.constant 0 : index
    %1 = vector.load %arg2[%c0_1, %c0_2] : memref<8x1024xf32, #tpu.memory_space<vmem>>, vector<8x1024xf32>
    tpu.vector_store %arg2[%c0_1, %c0_2], %0 {strides = array<i32>} : memref<8x1024xf32, #tpu.memory_space<vmem>>, vector<8x1024xf32>,
    return
  }
  func.func @transform_0(%arg0: i32) -> (i32, i32) {
    %c0_i32 = arith.constant 0 : i32
    %c0_i32_0 = arith.constant 0 : i32
    return %arg0, %c0_i32 : i32, i32
  }
  func.func @transform_1(%arg0: i32) -> (i32, i32) {
    %c0_i32 = arith.constant 0 : i32
    %c0_i32_0 = arith.constant 0 : i32
    return %arg0, %c0_i32 : i32, i32
  }
}

</mosaic_0001>

<bundles_post_ra>
// kernel: expand_temporal_dim.1
= control target key start
LH: loop header
LB: loop body
LE: loop exit
PB: predicated region body
PF: predicated region fallthrough
CT: control target
= control target key end

     0   :  { %s86_s0 = inlined_call_operand.vmem [shape: f32[8,1024], index: 0, kind: input, shape index: {}, may-alias: {0,1}]   ;;  %s87_s1 = inlined_call_operand.vmem [shape: f32[8,1024], index: 1, kind: output, shape index: {}, may-alias: {0,1}]  }
   0x1   :  { %v8_v0 = vld [vmem:[%s86_s0] sm:$0xff]  ;;  %v9_v1 = vld [vmem:[%s86_s0 + $0x8] sm:$0xff]  ;;  %v10_v2 = vld [vmem:[%s86_s0 + $0x10] sm:$0xff] }
   0x2   :  { %16 = vst [vmem:[%s87_s1] sm:$0xff] %v8_v0  ;;  %17 = vst [vmem:[%s87_s1 + $0x8] sm:$0xff] %v9_v1 }
   0x3   :  { %18 = vst [vmem:[%s87_s1 + $0x10] sm:$0xff] %v10_v2 }
   0xa   :  { %v11_v3 = vld [vmem:[%s86_s0 + $0x18] sm:$0xff]  ;;  %v12_v4 = vld [vmem:[%s86_s0 + $0x20] sm:$0xff]  ;;  %v13_v5 = vld [vmem:[%s86_s0 + $0x28] sm:$0xff] }
   0xb   :  { %19 = vst [vmem:[%s87_s1 + $0x18] sm:$0xff] %v11_v3  ;;  %20 = vst [vmem:[%s87_s1 + $0x20] sm:$0xff] %v12_v4 }
   0xc   :  { %21 = vst [vmem:[%s87_s1 + $0x28] sm:$0xff] %v13_v5 }
  0x13   :  { %v14_v6 = vld [vmem:[%s86_s0 + $0x30] sm:$0xff]  ;;  %v15_v7 = vld [vmem:[%s86_s0 + $0x38] sm:$0xff] }
  0x14   :  { %22 = vst [vmem:[%s87_s1 + $0x30] sm:$0xff] %v14_v6  ;;  %23 = vst [vmem:[%s87_s1 + $0x38] sm:$0xff] %v15_v7 }

</bundles_post_ra>
